<compile_context>
chip_gen: v6e
topology: v6e:2x2x1
jax: 0.10.0
libtpu: 0.0.40
codegen_flags: <defaults>
</compile_context>

<pallas_src>
import jax
import jax.numpy as jnp
from jax import lax
from jax.experimental import pallas as pl
from jax.experimental.pallas import tpu as pltpu


def _lstm_seq_kernel(xs_ref,     # (steps, T)  all timestep inputs (VMEM-resident)
                     wx_ref,     # (T, 4T)     fused x-path weights [pred|ign|fgt|sel]
                     wh_ref,     # (T, 4T)     fused h-path weights
                     b_ref,      # (1, 4T)     fused biases
                     h0_ref,     # (1, T)      initial last_predictions
                     c0_ref,     # (1, T)      initial memory
                     preds_ref,  # (steps, T)  per-step predictions (out)
                     mem_ref,    # (1, T)      final memory (out)
                     xg_ref):    # VMEM scratch (steps, 4T): precomputed x-path gates
    steps = xs_ref.shape[0]
    T = xs_ref.shape[1]

    # Hoist the recurrence-independent x-path: one (steps,T)@(T,4T) MXU matmul
    # (plus bias) for ALL timesteps, done once before the serial loop.
    xg_ref[...] = (
        jnp.dot(xs_ref[...], wx_ref[...], preferred_element_type=jnp.float32)
        + b_ref[...]
    )

    wh = wh_ref[...]                    # (T, 4T) stays in vregs/VMEM

    def step(t, carry):
        h, c = carry                    # (1, T), (1, T) f32

        # Serial critical path per step: one (1,T)@(T,4T) dot + VPU/EUP ops.
        gates = jax.nn.sigmoid(
            xg_ref[pl.ds(t, 1), :]
            + jnp.dot(h, wh, preferred_element_type=jnp.float32)
        )                               # (1, 4T)

        predicted  = gates[:, 0 * T:1 * T]   # prediction_layer
        ignoring   = gates[:, 1 * T:2 * T]   # ignoring_layer
        forgetting = gates[:, 2 * T:3 * T]   # forgetting_layer
        selecting  = gates[:, 3 * T:4 * T]   # selecting_layer

        activation = predicted * ignoring
        memory = forgetting * c
        activation_with_memory = jax.nn.sigmoid(activation + memory)

        logits = selecting * activation_with_memory

        # softmax over the token axis == torch.Softmax(dim=0) on a 1-D vector.
        # Exact division: approx reciprocal error would compound through the
        # recurrent state across timesteps.
        m = jnp.max(logits, axis=-1, keepdims=True)
        e = jnp.exp(logits - m)
        predictions = e / jnp.sum(e, axis=-1, keepdims=True)

        # Write this step's predictions into the resident output slab.
        preds_ref[pl.ds(t, 1), :] = predictions

        return predictions, activation_with_memory

    h_final, c_final = lax.fori_loop(
        0, steps, step, (h0_ref[...], c0_ref[...]), unroll=True)

    # Only the final memory goes back to HBM.
    mem_ref[...] = c_final
    del h_final


def lstm_forward_seq(xs, last_predictions, memory, params):
    """Run the recurrent cell over a whole sequence inside one pallas_call.

    xs: (steps, T) f32; last_predictions, memory: (T,) f32.
    Returns (predictions_per_step (steps, T), final_memory (T,)).
    A single module.forward call corresponds to steps == 1.
    """
    steps, T = xs.shape
    wx, wh, b = params
    h0 = last_predictions.reshape(1, T)
    c0 = memory.reshape(1, T)

    vmem = pl.BlockSpec(memory_space=pltpu.MemorySpace.VMEM)

    preds_seq, final_mem = pl.pallas_call(
        _lstm_seq_kernel,
        in_specs=[vmem] * 6,                 # everything fully VMEM-resident (tiny)
        out_specs=[vmem, vmem],
        out_shape=[
            jax.ShapeDtypeStruct((steps, T), jnp.float32),
            jax.ShapeDtypeStruct((1, T), jnp.float32),
        ],
        scratch_shapes=[
            pltpu.VMEM((steps, 4 * T), jnp.float32),   # precomputed x-path gates
        ],
    )(xs, wx, wh, b, h0, c0)

    return preds_seq, final_mem.reshape(T)


def init_params(key, tokens_count):
    """Deterministic init matching torch.nn.Linear default: U(-1/sqrt(in), 1/sqrt(in)).

    Produces fused, pre-transposed weights:
      wx (T, 4T): rows multiply x;   wh (T, 4T): rows multiply last_predictions
      column blocks are [prediction | ignoring | forgetting | selecting]
      b  (1, 4T): fused biases in the same order.
    """
    T = tokens_count
    in_features = 2 * T
    bound = 1.0 / jnp.sqrt(jnp.float32(in_features))
    wx_parts, wh_parts, b_parts = [], [], []
    for i in range(4):
        kw, kb = jax.random.split(jax.random.fold_in(key, i))
        w_t = jax.random.uniform(kw, (in_features, T), jnp.float32,
                                 minval=-bound, maxval=bound)   # W_g^T, (2T, T)
        bias = jax.random.uniform(kb, (T,), jnp.float32,
                                  minval=-bound, maxval=bound)
        wx_parts.append(w_t[:T, :])
        wh_parts.append(w_t[T:, :])
        b_parts.append(bias)
    wx = jnp.concatenate(wx_parts, axis=1)            # (T, 4T)
    wh = jnp.concatenate(wh_parts, axis=1)            # (T, 4T)
    b = jnp.concatenate(b_parts).reshape(1, 4 * T)    # (1, 4T)
    return wx, wh, b


def reference_step(x, h, c, params):
    """Pure-JAX single-step reference mirroring the PyTorch forward exactly."""
    wx, wh, b = params
    T = x.shape[0]
    gates = jax.nn.sigmoid(x @ wx + h @ wh + b[0])
    predicted = gates[0 * T:1 * T]
    ignoring = gates[1 * T:2 * T]
    forgetting = gates[2 * T:3 * T]
    selecting = gates[3 * T:4 * T]
    activation = predicted * ignoring
    mem = forgetting * c
    awm = jax.nn.sigmoid(activation + mem)
    logits = selecting * awm
    predictions = jax.nn.softmax(logits, axis=0)
    return predictions, awm


if __name__ == "__main__":
    tokens_count = 32
    steps = 8

    key = jax.random.PRNGKey(0)
    k_params, k_x = jax.random.split(key)

    params = init_params(k_params, tokens_count)
    xs = jax.random.normal(k_x, (steps, tokens_count), jnp.float32)

    # initial state (as in module __init__ / reset)
    last_predictions = jnp.zeros((tokens_count,), jnp.float32)
    memory = jnp.zeros((tokens_count,), jnp.float32)

    # Whole recurrent sequence runs inside a single pallas_call invocation.
    preds_seq, final_mem = lstm_forward_seq(xs, last_predictions, memory, params)
    jax.block_until_ready((preds_seq, final_mem))

    # correctness check against pure-JAX reference (state threaded step by step)
    h, c = last_predictions, memory
    ref_preds = []
    for t in range(steps):
        h, c = reference_step(xs[t], h, c, params)
        ref_preds.append(h)
    ref_preds = jnp.stack(ref_preds)

    assert jnp.allclose(preds_seq, ref_preds, atol=1e-3, rtol=1e-3), \
        float(jnp.max(jnp.abs(preds_seq - ref_preds)))
    assert jnp.allclose(final_mem, c, atol=1e-3, rtol=1e-3), \
        float(jnp.max(jnp.abs(final_mem - c)))

    print("KERNEL_OK")
</pallas_src>

<mosaic_0001>
module attributes {stable_mosaic.version = 11 : i64} {
  func.func @_lstm_seq_kernel(%arg0: memref<8x32xf32, #tpu.memory_space<vmem>>, %arg1: memref<32x128xf32, #tpu.memory_space<vmem>>, %arg2: memref<32x128xf32, #tpu.memory_space<vmem>>, %arg3: memref<1x128xf32, #tpu.memory_space<vmem>>, %arg4: memref<1x32xf32, #tpu.memory_space<vmem>>, %arg5: memref<1x32xf32, #tpu.memory_space<vmem>>, %arg6: memref<8x32xf32, #tpu.memory_space<vmem>>, %arg7: memref<1x32xf32, #tpu.memory_space<vmem>>, %arg8: memref<8x128xf32, #tpu.memory_space<vmem>>) attributes {dimension_semantics = [], scalar_prefetch = 0 : i64, scratch_operands = 1 : i64, tpu.core_type = #tpu.core_type<tc>} {
    %c0 = arith.constant 0 : index
    %c0_0 = arith.constant 0 : index
    %0 = vector.load %arg0[%c0, %c0_0] : memref<8x32xf32, #tpu.memory_space<vmem>>, vector<8x32xf32>
    %c0_1 = arith.constant 0 : index
    %c0_2 = arith.constant 0 : index
    %1 = vector.load %arg1[%c0_1, %c0_2] : memref<32x128xf32, #tpu.memory_space<vmem>>, vector<32x128xf32>
    %cst = arith.constant dense<0.000000e+00> : vector<8x128xf32>
    %2 = tpu.matmul %0, %1, %cst {dimension_numbers = #tpu.dot_dimension_numbers<[1], [0], [0], [1], [0, 0, 1, 1], [], []>} : vector<8x32xf32>, vector<32x128xf32>, vector<8x128xf32> -> vector<8x128xf32>
    %c0_3 = arith.constant 0 : index
    %c0_4 = arith.constant 0 : index
    %3 = vector.load %arg3[%c0_3, %c0_4] : memref<1x128xf32, #tpu.memory_space<vmem>>, vector<1x128xf32>
    %4 = vector.broadcast %3 : vector<1x128xf32> to vector<8x128xf32>
    %5 = arith.addf %2, %4 : vector<8x128xf32>
    %c0_5 = arith.constant 0 : index
    %c0_6 = arith.constant 0 : index
    %6 = vector.load %arg8[%c0_5, %c0_6] : memref<8x128xf32, #tpu.memory_space<vmem>>, vector<8x128xf32>
    tpu.vector_store %arg8[%c0_5, %c0_6], %5 {strides = array<i32>} : memref<8x128xf32, #tpu.memory_space<vmem>>, vector<8x128xf32>,
    %c0_7 = arith.constant 0 : index
    %c0_8 = arith.constant 0 : index
    %7 = vector.load %arg2[%c0_7, %c0_8] : memref<32x128xf32, #tpu.memory_space<vmem>>, vector<32x128xf32>
    %c0_9 = arith.constant 0 : index
    %c0_10 = arith.constant 0 : index
    %8 = vector.load %arg4[%c0_9, %c0_10] : memref<1x32xf32, #tpu.memory_space<vmem>>, vector<1x32xf32>
    %c0_11 = arith.constant 0 : index
    %c0_12 = arith.constant 0 : index
    %9 = vector.load %arg5[%c0_11, %c0_12] : memref<1x32xf32, #tpu.memory_space<vmem>>, vector<1x32xf32>
    %c0_i32 = arith.constant 0 : i32
    %10 = arith.index_cast %c0_i32 : i32 to index
    %c0_13 = arith.constant 0 : index
    %11 = vector.load %arg8[%10, %c0_13] : memref<8x128xf32, #tpu.memory_space<vmem>>, vector<1x128xf32>
    %cst_14 = arith.constant dense<0.000000e+00> : vector<1x128xf32>
    %12 = tpu.matmul %8, %7, %cst_14 {dimension_numbers = #tpu.dot_dimension_numbers<[1], [0], [0], [1], [0, 0, 1, 1], [], []>} : vector<1x32xf32>, vector<32x128xf32>, vector<1x128xf32> -> vector<1x128xf32>
    %13 = arith.addf %11, %12 : vector<1x128xf32>
    %14 = arith.negf %13 : vector<1x128xf32>
    %15 = math.exp %14 : vector<1x128xf32>
    %cst_15 = arith.constant 1.000000e+00 : f32
    %16 = vector.broadcast %cst_15 : f32 to vector<1x128xf32>
    %17 = arith.addf %16, %15 : vector<1x128xf32>
    %18 = arith.divf %16, %17 : vector<1x128xf32>
    %19 = vector.extract_strided_slice %18 {offsets = [0, 0], sizes = [1, 32], strides = [1, 1]} : vector<1x128xf32> to vector<1x32xf32>
    %20 = vector.extract_strided_slice %18 {offsets = [0, 32], sizes = [1, 32], strides = [1, 1]} : vector<1x128xf32> to vector<1x32xf32>
    %21 = vector.extract_strided_slice %18 {offsets = [0, 64], sizes = [1, 32], strides = [1, 1]} : vector<1x128xf32> to vector<1x32xf32>
    %22 = vector.extract_strided_slice %18 {offsets = [0, 96], sizes = [1, 32], strides = [1, 1]} : vector<1x128xf32> to vector<1x32xf32>
    %23 = arith.mulf %19, %20 : vector<1x32xf32>
    %24 = arith.mulf %21, %9 : vector<1x32xf32>
    %25 = arith.addf %23, %24 : vector<1x32xf32>
    %26 = arith.negf %25 : vector<1x32xf32>
    %27 = math.exp %26 : vector<1x32xf32>
    %cst_16 = arith.constant 1.000000e+00 : f32
    %28 = vector.broadcast %cst_16 : f32 to vector<1x32xf32>
    %29 = arith.addf %28, %27 : vector<1x32xf32>
    %30 = arith.divf %28, %29 : vector<1x32xf32>
    %31 = arith.mulf %22, %30 : vector<1x32xf32>
    %cst_17 = arith.constant dense<0xFF800000> : vector<1xf32>
    %32 = vector.multi_reduction <maximumf>, %31, %cst_17 [1] : vector<1x32xf32> to vector<1xf32>
    %33 = vector.shape_cast %32 : vector<1xf32> to vector<1x1xf32>
    %34 = vector.broadcast %33 : vector<1x1xf32> to vector<1x32xf32>
    %35 = arith.subf %31, %34 : vector<1x32xf32>
    %36 = math.exp %35 : vector<1x32xf32>
    %cst_18 = arith.constant dense<0.000000e+00> : vector<1xf32>
    %37 = vector.multi_reduction <add>, %36, %cst_18 [1] : vector<1x32xf32> to vector<1xf32>
    %38 = vector.shape_cast %37 : vector<1xf32> to vector<1x1xf32>
    %39 = vector.broadcast %38 : vector<1x1xf32> to vector<1x32xf32>
    %40 = arith.divf %36, %39 : vector<1x32xf32>
    %41 = arith.index_cast %c0_i32 : i32 to index
    %c0_19 = arith.constant 0 : index
    %42 = vector.load %arg6[%41, %c0_19] : memref<8x32xf32, #tpu.memory_space<vmem>>, vector<1x32xf32>
    tpu.vector_store %arg6[%41, %c0_19], %40 {strides = array<i32>} : memref<8x32xf32, #tpu.memory_space<vmem>>, vector<1x32xf32>,
    %c1_i32 = arith.constant 1 : i32
    %43 = arith.index_cast %c1_i32 : i32 to index
    %c0_20 = arith.constant 0 : index
    %44 = vector.load %arg8[%43, %c0_20] : memref<8x128xf32, #tpu.memory_space<vmem>>, vector<1x128xf32>
    %cst_21 = arith.constant dense<0.000000e+00> : vector<1x128xf32>
    %45 = tpu.matmul %40, %7, %cst_21 {dimension_numbers = #tpu.dot_dimension_numbers<[1], [0], [0], [1], [0, 0, 1, 1], [], []>} : vector<1x32xf32>, vector<32x128xf32>, vector<1x128xf32> -> vector<1x128xf32>
    %46 = arith.addf %44, %45 : vector<1x128xf32>
    %47 = arith.negf %46 : vector<1x128xf32>
    %48 = math.exp %47 : vector<1x128xf32>
    %cst_22 = arith.constant 1.000000e+00 : f32
    %49 = vector.broadcast %cst_22 : f32 to vector<1x128xf32>
    %50 = arith.addf %49, %48 : vector<1x128xf32>
    %51 = arith.divf %49, %50 : vector<1x128xf32>
    %52 = vector.extract_strided_slice %51 {offsets = [0, 0], sizes = [1, 32], strides = [1, 1]} : vector<1x128xf32> to vector<1x32xf32>
    %53 = vector.extract_strided_slice %51 {offsets = [0, 32], sizes = [1, 32], strides = [1, 1]} : vector<1x128xf32> to vector<1x32xf32>
    %54 = vector.extract_strided_slice %51 {offsets = [0, 64], sizes = [1, 32], strides = [1, 1]} : vector<1x128xf32> to vector<1x32xf32>
    %55 = vector.extract_strided_slice %51 {offsets = [0, 96], sizes = [1, 32], strides = [1, 1]} : vector<1x128xf32> to vector<1x32xf32>
    %56 = arith.mulf %52, %53 : vector<1x32xf32>
    %57 = arith.mulf %54, %30 : vector<1x32xf32>
    %58 = arith.addf %56, %57 : vector<1x32xf32>
    %59 = arith.negf %58 : vector<1x32xf32>
    %60 = math.exp %59 : vector<1x32xf32>
    %cst_23 = arith.constant 1.000000e+00 : f32
    %61 = vector.broadcast %cst_23 : f32 to vector<1x32xf32>
    %62 = arith.addf %61, %60 : vector<1x32xf32>
    %63 = arith.divf %61, %62 : vector<1x32xf32>
    %64 = arith.mulf %55, %63 : vector<1x32xf32>
    %cst_24 = arith.constant dense<0xFF800000> : vector<1xf32>
    %65 = vector.multi_reduction <maximumf>, %64, %cst_24 [1] : vector<1x32xf32> to vector<1xf32>
    %66 = vector.shape_cast %65 : vector<1xf32> to vector<1x1xf32>
    %67 = vector.broadcast %66 : vector<1x1xf32> to vector<1x32xf32>
    %68 = arith.subf %64, %67 : vector<1x32xf32>
    %69 = math.exp %68 : vector<1x32xf32>
    %cst_25 = arith.constant dense<0.000000e+00> : vector<1xf32>
    %70 = vector.multi_reduction <add>, %69, %cst_25 [1] : vector<1x32xf32> to vector<1xf32>
    %71 = vector.shape_cast %70 : vector<1xf32> to vector<1x1xf32>
    %72 = vector.broadcast %71 : vector<1x1xf32> to vector<1x32xf32>
    %73 = arith.divf %69, %72 : vector<1x32xf32>
    %74 = arith.index_cast %c1_i32 : i32 to index
    %c0_26 = arith.constant 0 : index
    %75 = vector.load %arg6[%74, %c0_26] : memref<8x32xf32, #tpu.memory_space<vmem>>, vector<1x32xf32>
    tpu.vector_store %arg6[%74, %c0_26], %73 {strides = array<i32>} : memref<8x32xf32, #tpu.memory_space<vmem>>, vector<1x32xf32>,
    %c2_i32 = arith.constant 2 : i32
    %76 = arith.index_cast %c2_i32 : i32 to index
    %c0_27 = arith.constant 0 : index
    %77 = vector.load %arg8[%76, %c0_27] : memref<8x128xf32, #tpu.memory_space<vmem>>, vector<1x128xf32>
    %cst_28 = arith.constant dense<0.000000e+00> : vector<1x128xf32>
    %78 = tpu.matmul %73, %7, %cst_28 {dimension_numbers = #tpu.dot_dimension_numbers<[1], [0], [0], [1], [0, 0, 1, 1], [], []>} : vector<1x32xf32>, vector<32x128xf32>, vector<1x128xf32> -> vector<1x128xf32>
    %79 = arith.addf %77, %78 : vector<1x128xf32>
    %80 = arith.negf %79 : vector<1x128xf32>
    %81 = math.exp %80 : vector<1x128xf32>
    %cst_29 = arith.constant 1.000000e+00 : f32
    %82 = vector.broadcast %cst_29 : f32 to vector<1x128xf32>
    %83 = arith.addf %82, %81 : vector<1x128xf32>
    %84 = arith.divf %82, %83 : vector<1x128xf32>
    %85 = vector.extract_strided_slice %84 {offsets = [0, 0], sizes = [1, 32], strides = [1, 1]} : vector<1x128xf32> to vector<1x32xf32>
    %86 = vector.extract_strided_slice %84 {offsets = [0, 32], sizes = [1, 32], strides = [1, 1]} : vector<1x128xf32> to vector<1x32xf32>
    %87 = vector.extract_strided_slice %84 {offsets = [0, 64], sizes = [1, 32], strides = [1, 1]} : vector<1x128xf32> to vector<1x32xf32>
    %88 = vector.extract_strided_slice %84 {offsets = [0, 96], sizes = [1, 32], strides = [1, 1]} : vector<1x128xf32> to vector<1x32xf32>
    %89 = arith.mulf %85, %86 : vector<1x32xf32>
    %90 = arith.mulf %87, %63 : vector<1x32xf32>
    %91 = arith.addf %89, %90 : vector<1x32xf32>
    %92 = arith.negf %91 : vector<1x32xf32>
    %93 = math.exp %92 : vector<1x32xf32>
    %cst_30 = arith.constant 1.000000e+00 : f32
    %94 = vector.broadcast %cst_30 : f32 to vector<1x32xf32>
    %95 = arith.addf %94, %93 : vector<1x32xf32>
    %96 = arith.divf %94, %95 : vector<1x32xf32>
    %97 = arith.mulf %88, %96 : vector<1x32xf32>
    %cst_31 = arith.constant dense<0xFF800000> : vector<1xf32>
    %98 = vector.multi_reduction <maximumf>, %97, %cst_31 [1] : vector<1x32xf32> to vector<1xf32>
    %99 = vector.shape_cast %98 : vector<1xf32> to vector<1x1xf32>
    %100 = vector.broadcast %99 : vector<1x1xf32> to vector<1x32xf32>
    %101 = arith.subf %97, %100 : vector<1x32xf32>
    %102 = math.exp %101 : vector<1x32xf32>
    %cst_32 = arith.constant dense<0.000000e+00> : vector<1xf32>
    %103 = vector.multi_reduction <add>, %102, %cst_32 [1] : vector<1x32xf32> to vector<1xf32>
    %104 = vector.shape_cast %103 : vector<1xf32> to vector<1x1xf32>
    %105 = vector.broadcast %104 : vector<1x1xf32> to vector<1x32xf32>
    %106 = arith.divf %102, %105 : vector<1x32xf32>
    %107 = arith.index_cast %c2_i32 : i32 to index
    %c0_33 = arith.constant 0 : index
    %108 = vector.load %arg6[%107, %c0_33] : memref<8x32xf32, #tpu.memory_space<vmem>>, vector<1x32xf32>
    tpu.vector_store %arg6[%107, %c0_33], %106 {strides = array<i32>} : memref<8x32xf32, #tpu.memory_space<vmem>>, vector<1x32xf32>,
    %c3_i32 = arith.constant 3 : i32
    %109 = arith.index_cast %c3_i32 : i32 to index
    %c0_34 = arith.constant 0 : index
    %110 = vector.load %arg8[%109, %c0_34] : memref<8x128xf32, #tpu.memory_space<vmem>>, vector<1x128xf32>
    %cst_35 = arith.constant dense<0.000000e+00> : vector<1x128xf32>
    %111 = tpu.matmul %106, %7, %cst_35 {dimension_numbers = #tpu.dot_dimension_numbers<[1], [0], [0], [1], [0, 0, 1, 1], [], []>} : vector<1x32xf32>, vector<32x128xf32>, vector<1x128xf32> -> vector<1x128xf32>
    %112 = arith.addf %110, %111 : vector<1x128xf32>
    %113 = arith.negf %112 : vector<1x128xf32>
    %114 = math.exp %113 : vector<1x128xf32>
    %cst_36 = arith.constant 1.000000e+00 : f32
    %115 = vector.broadcast %cst_36 : f32 to vector<1x128xf32>
    %116 = arith.addf %115, %114 : vector<1x128xf32>
    %117 = arith.divf %115, %116 : vector<1x128xf32>
    %118 = vector.extract_strided_slice %117 {offsets = [0, 0], sizes = [1, 32], strides = [1, 1]} : vector<1x128xf32> to vector<1x32xf32>
    %119 = vector.extract_strided_slice %117 {offsets = [0, 32], sizes = [1, 32], strides = [1, 1]} : vector<1x128xf32> to vector<1x32xf32>
    %120 = vector.extract_strided_slice %117 {offsets = [0, 64], sizes = [1, 32], strides = [1, 1]} : vector<1x128xf32> to vector<1x32xf32>
    %121 = vector.extract_strided_slice %117 {offsets = [0, 96], sizes = [1, 32], strides = [1, 1]} : vector<1x128xf32> to vector<1x32xf32>
    %122 = arith.mulf %118, %119 : vector<1x32xf32>
    %123 = arith.mulf %120, %96 : vector<1x32xf32>
    %124 = arith.addf %122, %123 : vector<1x32xf32>
    %125 = arith.negf %124 : vector<1x32xf32>
    %126 = math.exp %125 : vector<1x32xf32>
    %cst_37 = arith.constant 1.000000e+00 : f32
    %127 = vector.broadcast %cst_37 : f32 to vector<1x32xf32>
    %128 = arith.addf %127, %126 : vector<1x32xf32>
    %129 = arith.divf %127, %128 : vector<1x32xf32>
    %130 = arith.mulf %121, %129 : vector<1x32xf32>
    %cst_38 = arith.constant dense<0xFF800000> : vector<1xf32>
    %131 = vector.multi_reduction <maximumf>, %130, %cst_38 [1] : vector<1x32xf32> to vector<1xf32>
    %132 = vector.shape_cast %131 : vector<1xf32> to vector<1x1xf32>
    %133 = vector.broadcast %132 : vector<1x1xf32> to vector<1x32xf32>
    %134 = arith.subf %130, %133 : vector<1x32xf32>
    %135 = math.exp %134 : vector<1x32xf32>
    %cst_39 = arith.constant dense<0.000000e+00> : vector<1xf32>
    %136 = vector.multi_reduction <add>, %135, %cst_39 [1] : vector<1x32xf32> to vector<1xf32>
    %137 = vector.shape_cast %136 : vector<1xf32> to vector<1x1xf32>
    %138 = vector.broadcast %137 : vector<1x1xf32> to vector<1x32xf32>
    %139 = arith.divf %135, %138 : vector<1x32xf32>
    %140 = arith.index_cast %c3_i32 : i32 to index
    %c0_40 = arith.constant 0 : index
    %141 = vector.load %arg6[%140, %c0_40] : memref<8x32xf32, #tpu.memory_space<vmem>>, vector<1x32xf32>
    tpu.vector_store %arg6[%140, %c0_40], %139 {strides = array<i32>} : memref<8x32xf32, #tpu.memory_space<vmem>>, vector<1x32xf32>,
    %c4_i32 = arith.constant 4 : i32
    %142 = arith.index_cast %c4_i32 : i32 to index
    %c0_41 = arith.constant 0 : index
    %143 = vector.load %arg8[%142, %c0_41] : memref<8x128xf32, #tpu.memory_space<vmem>>, vector<1x128xf32>
    %cst_42 = arith.constant dense<0.000000e+00> : vector<1x128xf32>
    %144 = tpu.matmul %139, %7, %cst_42 {dimension_numbers = #tpu.dot_dimension_numbers<[1], [0], [0], [1], [0, 0, 1, 1], [], []>} : vector<1x32xf32>, vector<32x128xf32>, vector<1x128xf32> -> vector<1x128xf32>
    %145 = arith.addf %143, %144 : vector<1x128xf32>
    %146 = arith.negf %145 : vector<1x128xf32>
    %147 = math.exp %146 : vector<1x128xf32>
    %cst_43 = arith.constant 1.000000e+00 : f32
    %148 = vector.broadcast %cst_43 : f32 to vector<1x128xf32>
    %149 = arith.addf %148, %147 : vector<1x128xf32>
    %150 = arith.divf %148, %149 : vector<1x128xf32>
    %151 = vector.extract_strided_slice %150 {offsets = [0, 0], sizes = [1, 32], strides = [1, 1]} : vector<1x128xf32> to vector<1x32xf32>
    %152 = vector.extract_strided_slice %150 {offsets = [0, 32], sizes = [1, 32], strides = [1, 1]} : vector<1x128xf32> to vector<1x32xf32>
    %153 = vector.extract_strided_slice %150 {offsets = [0, 64], sizes = [1, 32], strides = [1, 1]} : vector<1x128xf32> to vector<1x32xf32>
    %154 = vector.extract_strided_slice %150 {offsets = [0, 96], sizes = [1, 32], strides = [1, 1]} : vector<1x128xf32> to vector<1x32xf32>
    %155 = arith.mulf %151, %152 : vector<1x32xf32>
    %156 = arith.mulf %153, %129 : vector<1x32xf32>
    %157 = arith.addf %155, %156 : vector<1x32xf32>
    %158 = arith.negf %157 : vector<1x32xf32>
    %159 = math.exp %158 : vector<1x32xf32>
    %cst_44 = arith.constant 1.000000e+00 : f32
    %160 = vector.broadcast %cst_44 : f32 to vector<1x32xf32>
    %161 = arith.addf %160, %159 : vector<1x32xf32>
    %162 = arith.divf %160, %161 : vector<1x32xf32>
    %163 = arith.mulf %154, %162 : vector<1x32xf32>
    %cst_45 = arith.constant dense<0xFF800000> : vector<1xf32>
    %164 = vector.multi_reduction <maximumf>, %163, %cst_45 [1] : vector<1x32xf32> to vector<1xf32>
    %165 = vector.shape_cast %164 : vector<1xf32> to vector<1x1xf32>
    %166 = vector.broadcast %165 : vector<1x1xf32> to vector<1x32xf32>
    %167 = arith.subf %163, %166 : vector<1x32xf32>
    %168 = math.exp %167 : vector<1x32xf32>
    %cst_46 = arith.constant dense<0.000000e+00> : vector<1xf32>
    %169 = vector.multi_reduction <add>, %168, %cst_46 [1] : vector<1x32xf32> to vector<1xf32>
    %170 = vector.shape_cast %169 : vector<1xf32> to vector<1x1xf32>
    %171 = vector.broadcast %170 : vector<1x1xf32> to vector<1x32xf32>
    %172 = arith.divf %168, %171 : vector<1x32xf32>
    %173 = arith.index_cast %c4_i32 : i32 to index
    %c0_47 = arith.constant 0 : index
    %174 = vector.load %arg6[%173, %c0_47] : memref<8x32xf32, #tpu.memory_space<vmem>>, vector<1x32xf32>
    tpu.vector_store %arg6[%173, %c0_47], %172 {strides = array<i32>} : memref<8x32xf32, #tpu.memory_space<vmem>>, vector<1x32xf32>,
    %c5_i32 = arith.constant 5 : i32
    %175 = arith.index_cast %c5_i32 : i32 to index
    %c0_48 = arith.constant 0 : index
    %176 = vector.load %arg8[%175, %c0_48] : memref<8x128xf32, #tpu.memory_space<vmem>>, vector<1x128xf32>
    %cst_49 = arith.constant dense<0.000000e+00> : vector<1x128xf32>
    %177 = tpu.matmul %172, %7, %cst_49 {dimension_numbers = #tpu.dot_dimension_numbers<[1], [0], [0], [1], [0, 0, 1, 1], [], []>} : vector<1x32xf32>, vector<32x128xf32>, vector<1x128xf32> -> vector<1x128xf32>
    %178 = arith.addf %176, %177 : vector<1x128xf32>
    %179 = arith.negf %178 : vector<1x128xf32>
    %180 = math.exp %179 : vector<1x128xf32>
    %cst_50 = arith.constant 1.000000e+00 : f32
    %181 = vector.broadcast %cst_50 : f32 to vector<1x128xf32>
    %182 = arith.addf %181, %180 : vector<1x128xf32>
    %183 = arith.divf %181, %182 : vector<1x128xf32>
    %184 = vector.extract_strided_slice %183 {offsets = [0, 0], sizes = [1, 32], strides = [1, 1]} : vector<1x128xf32> to vector<1x32xf32>
    %185 = vector.extract_strided_slice %183 {offsets = [0, 32], sizes = [1, 32], strides = [1, 1]} : vector<1x128xf32> to vector<1x32xf32>
    %186 = vector.extract_strided_slice %183 {offsets = [0, 64], sizes = [1, 32], strides = [1, 1]} : vector<1x128xf32> to vector<1x32xf32>
    %187 = vector.extract_strided_slice %183 {offsets = [0, 96], sizes = [1, 32], strides = [1, 1]} : vector<1x128xf32> to vector<1x32xf32>
    %188 = arith.mulf %184, %185 : vector<1x32xf32>
    %189 = arith.mulf %186, %162 : vector<1x32xf32>
    %190 = arith.addf %188, %189 : vector<1x32xf32>
    %191 = arith.negf %190 : vector<1x32xf32>
    %192 = math.exp %191 : vector<1x32xf32>
    %cst_51 = arith.constant 1.000000e+00 : f32
    %193 = vector.broadcast %cst_51 : f32 to vector<1x32xf32>
    %194 = arith.addf %193, %192 : vector<1x32xf32>
    %195 = arith.divf %193, %194 : vector<1x32xf32>
    %196 = arith.mulf %187, %195 : vector<1x32xf32>
    %cst_52 = arith.constant dense<0xFF800000> : vector<1xf32>
    %197 = vector.multi_reduction <maximumf>, %196, %cst_52 [1] : vector<1x32xf32> to vector<1xf32>
    %198 = vector.shape_cast %197 : vector<1xf32> to vector<1x1xf32>
    %199 = vector.broadcast %198 : vector<1x1xf32> to vector<1x32xf32>
    %200 = arith.subf %196, %199 : vector<1x32xf32>
    %201 = math.exp %200 : vector<1x32xf32>
    %cst_53 = arith.constant dense<0.000000e+00> : vector<1xf32>
    %202 = vector.multi_reduction <add>, %201, %cst_53 [1] : vector<1x32xf32> to vector<1xf32>
    %203 = vector.shape_cast %202 : vector<1xf32> to vector<1x1xf32>
    %204 = vector.broadcast %203 : vector<1x1xf32> to vector<1x32xf32>
    %205 = arith.divf %201, %204 : vector<1x32xf32>
    %206 = arith.index_cast %c5_i32 : i32 to index
    %c0_54 = arith.constant 0 : index
    %207 = vector.load %arg6[%206, %c0_54] : memref<8x32xf32, #tpu.memory_space<vmem>>, vector<1x32xf32>
    tpu.vector_store %arg6[%206, %c0_54], %205 {strides = array<i32>} : memref<8x32xf32, #tpu.memory_space<vmem>>, vector<1x32xf32>,
    %c6_i32 = arith.constant 6 : i32
    %208 = arith.index_cast %c6_i32 : i32 to index
    %c0_55 = arith.constant 0 : index
    %209 = vector.load %arg8[%208, %c0_55] : memref<8x128xf32, #tpu.memory_space<vmem>>, vector<1x128xf32>
    %cst_56 = arith.constant dense<0.000000e+00> : vector<1x128xf32>
    %210 = tpu.matmul %205, %7, %cst_56 {dimension_numbers = #tpu.dot_dimension_numbers<[1], [0], [0], [1], [0, 0, 1, 1], [], []>} : vector<1x32xf32>, vector<32x128xf32>, vector<1x128xf32> -> vector<1x128xf32>
    %211 = arith.addf %209, %210 : vector<1x128xf32>
    %212 = arith.negf %211 : vector<1x128xf32>
    %213 = math.exp %212 : vector<1x128xf32>
    %cst_57 = arith.constant 1.000000e+00 : f32
    %214 = vector.broadcast %cst_57 : f32 to vector<1x128xf32>
    %215 = arith.addf %214, %213 : vector<1x128xf32>
    %216 = arith.divf %214, %215 : vector<1x128xf32>
    %217 = vector.extract_strided_slice %216 {offsets = [0, 0], sizes = [1, 32], strides = [1, 1]} : vector<1x128xf32> to vector<1x32xf32>
    %218 = vector.extract_strided_slice %216 {offsets = [0, 32], sizes = [1, 32], strides = [1, 1]} : vector<1x128xf32> to vector<1x32xf32>
    %219 = vector.extract_strided_slice %216 {offsets = [0, 64], sizes = [1, 32], strides = [1, 1]} : vector<1x128xf32> to vector<1x32xf32>
    %220 = vector.extract_strided_slice %216 {offsets = [0, 96], sizes = [1, 32], strides = [1, 1]} : vector<1x128xf32> to vector<1x32xf32>
    %221 = arith.mulf %217, %218 : vector<1x32xf32>
    %222 = arith.mulf %219, %195 : vector<1x32xf32>
    %223 = arith.addf %221, %222 : vector<1x32xf32>
    %224 = arith.negf %223 : vector<1x32xf32>
    %225 = math.exp %224 : vector<1x32xf32>
    %cst_58 = arith.constant 1.000000e+00 : f32
    %226 = vector.broadcast %cst_58 : f32 to vector<1x32xf32>
    %227 = arith.addf %226, %225 : vector<1x32xf32>
    %228 = arith.divf %226, %227 : vector<1x32xf32>
    %229 = arith.mulf %220, %228 : vector<1x32xf32>
    %cst_59 = arith.constant dense<0xFF800000> : vector<1xf32>
    %230 = vector.multi_reduction <maximumf>, %229, %cst_59 [1] : vector<1x32xf32> to vector<1xf32>
    %231 = vector.shape_cast %230 : vector<1xf32> to vector<1x1xf32>
    %232 = vector.broadcast %231 : vector<1x1xf32> to vector<1x32xf32>
    %233 = arith.subf %229, %232 : vector<1x32xf32>
    %234 = math.exp %233 : vector<1x32xf32>
    %cst_60 = arith.constant dense<0.000000e+00> : vector<1xf32>
    %235 = vector.multi_reduction <add>, %234, %cst_60 [1] : vector<1x32xf32> to vector<1xf32>
    %236 = vector.shape_cast %235 : vector<1xf32> to vector<1x1xf32>
    %237 = vector.broadcast %236 : vector<1x1xf32> to vector<1x32xf32>
    %238 = arith.divf %234, %237 : vector<1x32xf32>
    %239 = arith.index_cast %c6_i32 : i32 to index
    %c0_61 = arith.constant 0 : index
    %240 = vector.load %arg6[%239, %c0_61] : memref<8x32xf32, #tpu.memory_space<vmem>>, vector<1x32xf32>
    tpu.vector_store %arg6[%239, %c0_61], %238 {strides = array<i32>} : memref<8x32xf32, #tpu.memory_space<vmem>>, vector<1x32xf32>,
    %c7_i32 = arith.constant 7 : i32
    %241 = arith.index_cast %c7_i32 : i32 to index
    %c0_62 = arith.constant 0 : index
    %242 = vector.load %arg8[%241, %c0_62] : memref<8x128xf32, #tpu.memory_space<vmem>>, vector<1x128xf32>
    %cst_63 = arith.constant dense<0.000000e+00> : vector<1x128xf32>
    %243 = tpu.matmul %238, %7, %cst_63 {dimension_numbers = #tpu.dot_dimension_numbers<[1], [0], [0], [1], [0, 0, 1, 1], [], []>} : vector<1x32xf32>, vector<32x128xf32>, vector<1x128xf32> -> vector<1x128xf32>
    %244 = arith.addf %242, %243 : vector<1x128xf32>
    %245 = arith.negf %244 : vector<1x128xf32>
    %246 = math.exp %245 : vector<1x128xf32>
    %cst_64 = arith.constant 1.000000e+00 : f32
    %247 = vector.broadcast %cst_64 : f32 to vector<1x128xf32>
    %248 = arith.addf %247, %246 : vector<1x128xf32>
    %249 = arith.divf %247, %248 : vector<1x128xf32>
    %250 = vector.extract_strided_slice %249 {offsets = [0, 0], sizes = [1, 32], strides = [1, 1]} : vector<1x128xf32> to vector<1x32xf32>
    %251 = vector.extract_strided_slice %249 {offsets = [0, 32], sizes = [1, 32], strides = [1, 1]} : vector<1x128xf32> to vector<1x32xf32>
    %252 = vector.extract_strided_slice %249 {offsets = [0, 64], sizes = [1, 32], strides = [1, 1]} : vector<1x128xf32> to vector<1x32xf32>
    %253 = vector.extract_strided_slice %249 {offsets = [0, 96], sizes = [1, 32], strides = [1, 1]} : vector<1x128xf32> to vector<1x32xf32>
    %254 = arith.mulf %250, %251 : vector<1x32xf32>
    %255 = arith.mulf %252, %228 : vector<1x32xf32>
    %256 = arith.addf %254, %255 : vector<1x32xf32>
    %257 = arith.negf %256 : vector<1x32xf32>
    %258 = math.exp %257 : vector<1x32xf32>
    %cst_65 = arith.constant 1.000000e+00 : f32
    %259 = vector.broadcast %cst_65 : f32 to vector<1x32xf32>
    %260 = arith.addf %259, %258 : vector<1x32xf32>
    %261 = arith.divf %259, %260 : vector<1x32xf32>
    %262 = arith.mulf %253, %261 : vector<1x32xf32>
    %cst_66 = arith.constant dense<0xFF800000> : vector<1xf32>
    %263 = vector.multi_reduction <maximumf>, %262, %cst_66 [1] : vector<1x32xf32> to vector<1xf32>
    %264 = vector.shape_cast %263 : vector<1xf32> to vector<1x1xf32>
    %265 = vector.broadcast %264 : vector<1x1xf32> to vector<1x32xf32>
    %266 = arith.subf %262, %265 : vector<1x32xf32>
    %267 = math.exp %266 : vector<1x32xf32>
    %cst_67 = arith.constant dense<0.000000e+00> : vector<1xf32>
    %268 = vector.multi_reduction <add>, %267, %cst_67 [1] : vector<1x32xf32> to vector<1xf32>
    %269 = vector.shape_cast %268 : vector<1xf32> to vector<1x1xf32>
    %270 = vector.broadcast %269 : vector<1x1xf32> to vector<1x32xf32>
    %271 = arith.divf %267, %270 : vector<1x32xf32>
    %272 = arith.index_cast %c7_i32 : i32 to index
    %c0_68 = arith.constant 0 : index
    %273 = vector.load %arg6[%272, %c0_68] : memref<8x32xf32, #tpu.memory_space<vmem>>, vector<1x32xf32>
    tpu.vector_store %arg6[%272, %c0_68], %271 {strides = array<i32>} : memref<8x32xf32, #tpu.memory_space<vmem>>, vector<1x32xf32>,
    %c8_i32 = arith.constant 8 : i32
    %c0_69 = arith.constant 0 : index
    %c0_70 = arith.constant 0 : index
    %274 = vector.load %arg7[%c0_69, %c0_70] : memref<1x32xf32, #tpu.memory_space<vmem>>, vector<1x32xf32>
    tpu.vector_store %arg7[%c0_69, %c0_70], %261 {strides = array<i32>} : memref<1x32xf32, #tpu.memory_space<vmem>>, vector<1x32xf32>,
    return
  }
}

</mosaic_0001>

<bundles_post_ra>
// kernel: tpu_custom_call.1
= control target key start
LH: loop header
LB: loop body
LE: loop exit
PB: predicated region body
PF: predicated region fallthrough
CT: control target
= control target key end

     0   :  { %13 = vsyncpa [#allocation4], 0  ;;  %s1837_s0 = inlined_call_operand.hbm [shape: f32[8,32], index: 0, kind: input, shape index: {}]   ;;  %s1838_s1 = inlined_call_operand.hbm [shape: f32[32,128], index: 1, kind: input, shape index: {}]   ;;  %s1839_s2 = inlined_call_operand.hbm [shape: f32[32,128], index: 2, kind: input, shape index: {}]   ;;  %s1840_s3 = inlined_call_operand.vmem [shape: f32[1,128], index: 3, kind: input, shape index: {}]   ;;  %s1841_s4 = inlined_call_operand.vmem [shape: f32[1,32], index: 4, kind: input, shape index: {}]   ;;  %s1842_s5 = inlined_call_operand.vmem [shape: f32[1,32], index: 5, kind: input, shape index: {}]   ;;  %s1843_s6 = inlined_call_operand.hbm [shape: f32[8,32], index: 6, kind: output, shape index: {0}]   ;;  %s1844_s7 = inlined_call_operand.hbm [shape: f32[1,32], index: 7, kind: output, shape index: {1}]  }
   0x1   :  { %14 = vsyncpa [#allocation7], 0 }
   0x2   :  { %15 = vsyncpa [#allocation5], 0 }
   0x3   :  { %16 = vsyncpa [#allocation11], 0  ;;  %s1585_s24 = smov [#allocation6]  }
   0x4   :  { %s32_s25 = sshll.u32 %s1585_s24, 4  ;;  %s33_s25 = int_to_ptr.vmem [resolvable:$true] %s32_s25 }
   0x5   :  { %s1485_s26 = scalar_lea.vmem %s33_s25, 512  ;;  %p1490_p1 = scmp.lt.s32.totalorder %s33_s25, %s33_s25 }
   0x6   :  { %p1486_p0 = scmp.ne.s32.totalorder %s33_s25, %s1485_s26  ;;  %p1491_p2 = scmp.lt.s32.totalorder %s1485_s26, %s1485_s26 }
   0x8   :  { %p1492_p3 = por %p1491_p2, %p1490_p1 }
   0xa   :  { %p1493_p4 = pnand %p1492_p3, %p1486_p0 }
   0xc   :  { %1496 = shalt.err (!%p1493_p4)
}
   0xd   :  { %s1586_s27 = smov 128   ;;  %s1587_s28 = smov 8  }
   0xe   :  { %38 = dma.hbm_to_vmem [thread:$0]  %s1838_s1, 512, %s33_s25, [#allocation7], %s1586_s27, %s1586_s27, %s1587_s28  }
   0xf   :  { %s1588_s8 = smov [#allocation3]   ;;  %s1589_s10 = smov [#allocation8]  }
  0x10   :  { %s23_s9 = sshll.u32 %s1588_s8, 4  ;;  %s44_s11 = sshll.u32 %s1589_s10, 4  ;;  %s24_s9 = int_to_ptr.vmem [resolvable:$true] %s23_s9  ;;  %s45_s11 = int_to_ptr.vmem [resolvable:$true] %s44_s11 }
  0x11   :  { %s1505_s12 = scalar_lea.vmem %s24_s9, 128  ;;  %p1510_p6 = scmp.lt.s32.totalorder %s24_s9, %s24_s9 }
  0x12   :  { %p1506_p5 = scmp.ne.s32.totalorder %s24_s9, %s1505_s12  ;;  %p1511_p7 = scmp.lt.s32.totalorder %s1505_s12, %s1505_s12 }
  0x14   :  { %p1512_p8 = por %p1511_p7, %p1510_p6 }
  0x16   :  { %p1513_p9 = pnand %p1512_p8, %p1506_p5 }
  0x18   :  { %1516 = shalt.err (!%p1513_p9)
}
  0x19   :  { %26 = dma.hbm_to_vmem [thread:$0]  %s1837_s0, 128, %s24_s9, [#allocation4]  }
  0x1a   :  { %s1525_s15 = scalar_lea.vmem %s45_s11, 512  ;;  %p1530_p11 = scmp.lt.s32.totalorder %s45_s11, %s45_s11 }
  0x1b   :  { %p1526_p10 = scmp.ne.s32.totalorder %s45_s11, %s1525_s15  ;;  %p1531_p12 = scmp.lt.s32.totalorder %s1525_s15, %s1525_s15 }
  0x1d   :  { %p1532_p13 = por %p1531_p12, %p1530_p11 }
  0x1f   :  { %p1533_p0 = pnand %p1532_p13, %p1526_p10 }
  0x21   :  { %1536 = shalt.err (!%p1533_p0)
}
  0x22   :  { %50 = dma.hbm_to_vmem [thread:$0]  %s1839_s2, 512, %s45_s11, [#allocation7], %s1586_s27, %s1586_s27, %s1587_s28  }
  0x23   :  { %1577 = dma.done.wait [#allocation4], 128  }
  0x24   :  { %1578 = vsyncadd [#allocation4], 4294967168 }
  0x25   :  { %1579 = dma.done.wait [#allocation7], 1024  }
  0x26   :  { %1580 = vsyncadd [#allocation7], 4294966272  ;;  %v1590_v0 = vmov 0.0   ;;  %vm1591_vm0 = vmmov 0   ;;  %v70_v1 = vld [vmem:[#allocation6 + $0x18] sm:$0xff]  ;;  %v69_v2 = vld [vmem:[#allocation6 + $0x10] sm:$0xff] }
  0x27   :  { %1270 = vmatprep.subr.mxu0 %v1590_v0  ;;  %1278 = vmatprep.mubr.msk.f32.mxu0 %vm1591_vm0, %v1590_v0  ;;  %v1652_v3 = vld [vmem:[#allocation8 + $0x18] sm:$0xff]  ;;  %v68_v4 = vld [vmem:[#allocation6 + $0x8] sm:$0xff]  ;;  %v1656_v5 = vld [vmem:[#allocation8 + $0x10] sm:$0xff]  ;;  %vm78_vm1 = vcmask 261120   ;;  %s1592_s19 = smov 64   ;;  %s1593_s20 = smov 96  }
  0x28   :  { %1281 = vmatprep.subr.mxu1 %v1590_v0  ;;  %1289 = vmatprep.mubr.msk.f32.mxu1 %vm1591_vm0, %v1590_v0  ;;  %v1659_v6 = vld [vmem:[#allocation8 + $0x8] sm:$0xff]  ;;  %v67_v7 = vld [vmem:[#allocation6] sm:$0xff]  ;;  %v66_v8 = vld [vmem:[#allocation3] sm:$0xff]  ;;  %vm270_vm2 = vcmask 1041152   ;;  %vm281_vm3 = vcmask 253952   ;;  %s1595_s21 = smov [#allocation10]  }
  0x29   :  { %1271 = vmatpush3.msra.mxu0 %v70_v1  ;;  %1282 = vmatpush3.msra.mxu1 %v1652_v3  ;;  %v1664_v9 = vld [vmem:[#allocation8] sm:$0xff]  ;;  %v157_v10 = vld [vmem:[%s1841_s4] sm:$0x1]  ;;  %s1184_s22 = sshll.u32 %s1595_s21, 4  ;;  %s1185_s22 = int_to_ptr.vmem [resolvable:$true] %s1184_s22 }
  0x2a   :  { %1272 = vmatprep.subr.mxu0 %v1590_v0  ;;  %1283 = vmatprep.subr.mxu1 %v1590_v0  ;;  %v1202_v11 = vld [vmem:[%s1842_s5] ss:$0 sm:$0xff]  ;;  %s1537_s23 = scalar_lea.vmem %s1185_s22, 16  ;;  %s1541_s24 = scalar_lea.vmem %s1185_s22, 32 }
  0x2b   :  { %1273 = vmatpush3.msra.mxu0 %v69_v2  ;;  %1284 = vmatpush3.msra.mxu1 %v1656_v5  ;;  %v1198_v12 = vld [vmem:[%s1840_s3] ss:$0 sm:$0xff]  ;;  %s1594_s3 = smov 32   ;;  %p1538_p1 = scmp.ne.s32.totalorder %s1185_s22, %s1537_s23 }
  0x2c   :  { %1274 = vmatprep.subr.mxu0 %v1590_v0  ;;  %1285 = vmatprep.subr.mxu1 %v1590_v0  ;;  %p1542_p2 = scmp.lt.s32.totalorder %s1185_s22, %s1185_s22  ;;  %p1543_p3 = scmp.lt.s32.totalorder %s1541_s24, %s1537_s23 }
  0x2d   :  { %1275 = vmatpush3.msra.mxu0 %v68_v4  ;;  %1286 = vmatpush3.msra.mxu1 %v1659_v6 }
  0x2e   :  { %1276 = vmatprep.subr.mxu0 %v1590_v0  ;;  %1287 = vmatprep.subr.mxu1 %v1590_v0  ;;  %p1544_p4 = por %p1543_p3, %p1542_p2 }
  0x2f   :  { %1277 = vmatpush3.msra.mxu0 %v67_v7  ;;  %1288 = vmatpush3.msra.mxu1 %v1664_v9 }
  0x30   :  { %1279 = vmatmul.mubr.msk.f32.vlgmr.msra.gmra.mxu0 %vm78_vm1, %v66_v8  ;;  %1290 = vmatmul.mubr.msk.f32.vlgmr.msra.gmra.mxu1 %vm78_vm1, %v157_v10  ;;  %p1545_p5 = pnand %p1544_p4, %p1538_p1 }
  0x31   :  { %250 = vrot.lane.b32.xlu0 %v1202_v11, %s1592_s19  ;;  %1292 = vmatprep.subr.mxu0 %v1590_v0 }
  0x32   :  { %1300 = vmatprep.mubr.msk.f32.mxu0 %vm1591_vm0, %v1590_v0  ;;  %1293 = vmatpush3.msra.mxu0 %v1652_v3 }
  0x33   :  { %1303 = vmatprep.subr.mxu1 %v1590_v0  ;;  %1294 = vmatprep.subr.mxu0 %v1590_v0 }
  0x34   :  { %1304 = vmatpush3.msra.mxu1 %v1652_v3  ;;  %1295 = vmatpush3.msra.mxu0 %v1656_v5 }
  0x35   :  { %1305 = vmatprep.subr.mxu1 %v1590_v0  ;;  %1296 = vmatprep.subr.mxu0 %v1590_v0 }
  0x36   :  { %1306 = vmatpush3.msra.mxu1 %v1656_v5  ;;  %1297 = vmatpush3.msra.mxu0 %v1659_v6 }
  0x37   :  { %1307 = vmatprep.subr.mxu1 %v1590_v0  ;;  %1298 = vmatprep.subr.mxu0 %v1590_v0 }
  0x38   :  { %1308 = vmatpush3.msra.mxu1 %v1659_v6  ;;  %1299 = vmatpush3.msra.mxu0 %v1664_v9 }
  0x39   :  { %1309 = vmatprep.subr.mxu1 %v1590_v0  ;;  %1311 = vmatprep.mubr.msk.f32.mxu1 %vm1591_vm0, %v1590_v0 }
  0x3a   :  { %1310 = vmatpush3.msra.mxu1 %v1664_v9  ;;  %1314 = vmatprep.subr.mxu0 %v1590_v0 }
  0x3b   :  { %1325 = vmatprep.subr.mxu1 %v1590_v0 }
  0xa3   :  { %v251_v23 = vpop.permute.xlu0 %250 }
  0xf0   :  { %v148_v13 = vpop.f32.mrf.mxu0  ;;  %v229_v15 = vpop.f32.mrf.mxu1 }
  0xf1   :  { %v149_v14 = vadd.f32 %v1198_v12, %v148_v13 }
  0xf2   :  { %v1280_v16 = vpop.f32.mrf.mxu0  ;;  %v1291_v17 = vpop.f32.mrf.mxu1 }
  0xf3   :  { %152 = vst [vmem:[#allocation2] sm:$0xff] %v149_v14 }
  0xfa   :  { %v159_v18 = vld [vmem:[#allocation2] sm:$0x1]  ;;  %v292_v47 = vld [vmem:[#allocation2 + $0x1] sm:$0x1] }
  0xfb   :  { %v233_v19 = vadd.f32 %v229_v15, %v159_v18 }
  0xfd   :  { %v1201_v20 = vmul.f32 -1.442695, %v233_v19  ;;  %v417_v19 = vld [vmem:[#allocation2 + $0x2] sm:$0x1] }
  0xff   :  { %1381 = vpow2.f32 %v1201_v20 }
 0x10c   :  { %v1382_v21 = vpop.eup %1381 }
 0x10d   :  { %v237_v22 = vadd.f32 1.0, %v1382_v21 }
 0x10f   :  { %1383 = vrcp.f32 %v237_v22 }
 0x11c   :  { %v1384_v24 = vpop.eup %1383 }
 0x11d   :  { %v253_v25 = vmul.f32 %v1384_v24, %v251_v23  ;;  %241 = vrot.lane.b32.xlu0 %v1384_v24, %s1593_s20 }
 0x11f   :  { %255 = vrot.lane.b32.xlu1 %v253_v25, %s1592_s19 }
 0x18f   :  { %v242_v26 = vpop.permute.xlu0 %241 }
 0x190   :  { %v244_v27 = vmul.f32 %v1384_v24, %v242_v26 }
 0x191   :  { %v256_v28 = vpop.permute.xlu1 %255 }
 0x192   :  { %v258_v29 = vadd.f32 %v256_v28, %v244_v27 }
 0x194   :  { %v1203_v30 = vmul.f32 -1.442695, %v258_v29 }
 0x196   :  { %1385 = vpow2.f32 %v1203_v30 }
 0x1a3   :  { %v1386_v31 = vpop.eup %1385 }
 0x1a4   :  { %v262_v32 = vadd.f32 1.0, %v1386_v31 }
 0x1a6   :  { %1387 = vrcp.f32 %v262_v32 }
 0x1b3   :  { %v1388_v33 = vpop.eup %1387 }
 0x1b4   :  { %266 = vrot.lane.b32.xlu1 %v1388_v33, %s1593_s20 }
 0x226   :  { %v267_v34 = vpop.permute.xlu1 %266 }
 0x227   :  { %v269_v35 = vmul.f32 %v1384_v24, %v267_v34 }
 0x229   :  { %v271_v36 = vsel %vm270_vm2, %v269_v35, -inf }
 0x22a   :  { %272 = vmax.xlane.f32.xlu0 %v271_v36 }
 0x2b3   :  { %v273_v37 = vpop.xlane.xlu0 %272 }
 0x2b4   :  { %v274_v38 = vsub.f32 %v269_v35, %v273_v37 }
 0x2b6   :  { %v275_v39 = vmul.f32 1.442695, %v274_v38 }
 0x2b8   :  { %1389 = vpow2.f32 %v275_v39 }
 0x2c5   :  { %v1390_v40 = vpop.eup %1389 }
 0x2c6   :  { %278 = vrot.lane.b32.xlu1 %v1390_v40, %s1594_s3 }
 0x338   :  { %v279_v41 = vpop.permute.xlu1 %278 }
 0x339   :  { %v282_v42 = vsel %vm281_vm3, %v279_v41, 0.0 }
 0x33a   :  { %283 = vadd.xlane.f32.xlu1 %v282_v42 }
 0x34b   :  { %377 = vrot.lane.b32.xlu1 %v1388_v33, %s1592_s19 }
 0x3c3   :  { %v284_v43 = vpop.xlane.xlu1 %283 }
 0x3c4   :  { %1391 = vrcp.f32 %v284_v43 }
 0x3c7   :  { %v378_v55 = vpop.permute.xlu1 %377 }
 0x3d1   :  { %v1392_v44 = vpop.eup %1391 }
 0x3d2   :  { %v286_v45 = vmul.f32 %v1392_v44, %v1390_v40 }
 0x3d4   :  { %288 = vrot.lane.b32.xlu0 %v286_v45, %s1594_s3 }
 0x446   :  { %v289_v46 = vpop.permute.xlu0 %288 }
 0x447   :  { %291 = vst.msk [vmem:[#allocation9] sm:$0x1] %vm281_vm3, %v289_v46  ;;  %1301 = vmatmul.mubr.msk.f32.vlgmr.msra.gmra.mxu0 %vm78_vm1, %v289_v46 }
 0x448   :  { %1315 = vmatpush3.msra.mxu0 %v1652_v3  ;;  %1322 = vmatprep.mubr.msk.f32.mxu0 %vm1591_vm0, %v1590_v0 }
 0x449   :  { %1316 = vmatprep.subr.mxu0 %v1590_v0 }
 0x44a   :  { %1317 = vmatpush3.msra.mxu0 %v1656_v5 }
 0x44b   :  { %1318 = vmatprep.subr.mxu0 %v1590_v0 }
 0x44c   :  { %1319 = vmatpush3.msra.mxu0 %v1659_v6 }
 0x44d   :  { %1320 = vmatprep.subr.mxu0 %v1590_v0 }
 0x44e   :  { %1321 = vmatpush3.msra.mxu0 %v1664_v9 }
 0x44f   :  { %1336 = vmatprep.subr.mxu0 %v1590_v0 }
 0x507   :  { %v361_v48 = vpop.f32.mrf.mxu0 }
 0x508   :  { %v365_v49 = vadd.f32 %v361_v48, %v292_v47 }
 0x509   :  { %v1302_v50 = vpop.f32.mrf.mxu0 }
 0x50a   :  { %v1205_v51 = vmul.f32 -1.442695, %v365_v49  ;;  %v542_v50 = vld [vmem:[#allocation2 + $0x3] sm:$0x1] }
 0x50c   :  { %1393 = vpow2.f32 %v1205_v51 }
 0x519   :  { %v1394_v52 = vpop.eup %1393 }
 0x51a   :  { %v369_v53 = vadd.f32 1.0, %v1394_v52 }
 0x51c   :  { %1395 = vrcp.f32 %v369_v53 }
 0x529   :  { %v1396_v54 = vpop.eup %1395 }
 0x52a   :  { %373 = vrot.lane.b32.xlu0 %v1396_v54, %s1593_s20  ;;  %v380_v56 = vmul.f32 %v1396_v54, %v378_v55 }
 0x52e   :  { %382 = vrot.lane.b32.xlu0 %v380_v56, %s1592_s19 }
 0x59c   :  { %v374_v57 = vpop.permute.xlu0 %373 }
 0x59d   :  { %v376_v58 = vmul.f32 %v1396_v54, %v374_v57 }
 0x5a0   :  { %v383_v59 = vpop.permute.xlu0 %382 }
 0x5a1   :  { %v385_v60 = vadd.f32 %v383_v59, %v376_v58 }
 0x5a3   :  { %v1206_v61 = vmul.f32 -1.442695, %v385_v60 }
 0x5a5   :  { %1397 = vpow2.f32 %v1206_v61 }
 0x5b2   :  { %v1398_v62 = vpop.eup %1397 }
 0x5b3   :  { %v389_v63 = vadd.f32 1.0, %v1398_v62 }
 0x5b5   :  { %1399 = vrcp.f32 %v389_v63 }
 0x5c2   :  { %v1400_v1 = vpop.eup %1399 }
 0x5c3   :  { %393 = vrot.lane.b32.xlu1 %v1400_v1, %s1593_s20 }
 0x635   :  { %v394_v2 = vpop.permute.xlu1 %393 }
 0x636   :  { %v396_v4 = vmul.f32 %v1396_v54, %v394_v2 }
 0x638   :  { %v397_v7 = vsel %vm270_vm2, %v396_v4, -inf }
 0x639   :  { %398 = vmax.xlane.f32.xlu0 %v397_v7 }
 0x6c2   :  { %v399_v8 = vpop.xlane.xlu0 %398 }
 0x6c3   :  { %v400_v10 = vsub.f32 %v396_v4, %v399_v8 }
 0x6c5   :  { %v401_v11 = vmul.f32 1.442695, %v400_v10 }
 0x6c7   :  { %1401 = vpow2.f32 %v401_v11 }
 0x6d4   :  { %v1402_v12 = vpop.eup %1401 }
 0x6d5   :  { %404 = vrot.lane.b32.xlu1 %v1402_v12, %s1594_s3 }
 0x747   :  { %v405_v13 = vpop.permute.xlu1 %404 }
 0x748   :  { %v407_v14 = vsel %vm281_vm3, %v405_v13, 0.0 }
 0x749   :  { %408 = vadd.xlane.f32.xlu1 %v407_v14 }
 0x75a   :  { %502 = vrot.lane.b32.xlu1 %v1400_v1, %s1592_s19 }
 0x7d2   :  { %v409_v15 = vpop.xlane.xlu1 %408 }
 0x7d3   :  { %1403 = vrcp.f32 %v409_v15 }
 0x7d6   :  { %v503_v27 = vpop.permute.xlu1 %502 }
 0x7e0   :  { %v1404_v16 = vpop.eup %1403 }
 0x7e1   :  { %v411_v17 = vmul.f32 %v1404_v16, %v1402_v12 }
 0x7e3   :  { %413 = vrot.lane.b32.xlu0 %v411_v17, %s1594_s3 }
 0x855   :  { %v414_v18 = vpop.permute.xlu0 %413 }
 0x856   :  { %416 = vst.msk [vmem:[#allocation9 + $0x1] sm:$0x1] %vm281_vm3, %v414_v18  ;;  %1312 = vmatmul.mubr.msk.f32.vlgmr.msra.gmra.mxu1 %vm78_vm1, %v414_v18 }
 0x857   :  { %1326 = vmatpush3.msra.mxu1 %v1652_v3  ;;  %1333 = vmatprep.mubr.msk.f32.mxu1 %vm1591_vm0, %v1590_v0 }
 0x858   :  { %1327 = vmatprep.subr.mxu1 %v1590_v0 }
 0x859   :  { %1328 = vmatpush3.msra.mxu1 %v1656_v5 }
 0x85a   :  { %1329 = vmatprep.subr.mxu1 %v1590_v0 }
 0x85b   :  { %1330 = vmatpush3.msra.mxu1 %v1659_v6 }
 0x85c   :  { %1331 = vmatprep.subr.mxu1 %v1590_v0 }
 0x85d   :  { %1332 = vmatpush3.msra.mxu1 %v1664_v9 }
 0x85e   :  { %1347 = vmatprep.subr.mxu1 %v1590_v0 }
 0x916   :  { %v486_v20 = vpop.f32.mrf.mxu1 }
 0x917   :  { %v490_v21 = vadd.f32 %v486_v20, %v417_v19 }
 0x918   :  { %v1313_v22 = vpop.f32.mrf.mxu1 }
 0x919   :  { %v1208_v23 = vmul.f32 -1.442695, %v490_v21  ;;  %v667_v22 = vld [vmem:[#allocation2 + $0x4] sm:$0x1] }
 0x91b   :  { %1405 = vpow2.f32 %v1208_v23 }
 0x928   :  { %v1406_v24 = vpop.eup %1405 }
 0x929   :  { %v494_v25 = vadd.f32 1.0, %v1406_v24 }
 0x92b   :  { %1407 = vrcp.f32 %v494_v25 }
 0x938   :  { %v1408_v26 = vpop.eup %1407 }
 0x939   :  { %498 = vrot.lane.b32.xlu0 %v1408_v26, %s1593_s20  ;;  %v505_v28 = vmul.f32 %v1408_v26, %v503_v27 }
 0x93d   :  { %507 = vrot.lane.b32.xlu0 %v505_v28, %s1592_s19 }
 0x9ab   :  { %v499_v29 = vpop.permute.xlu0 %498 }
 0x9ac   :  { %v501_v30 = vmul.f32 %v1408_v26, %v499_v29 }
 0x9af   :  { %v508_v31 = vpop.permute.xlu0 %507 }
 0x9b0   :  { %v510_v32 = vadd.f32 %v508_v31, %v501_v30 }
 0x9b2   :  { %v1209_v33 = vmul.f32 -1.442695, %v510_v32 }
 0x9b4   :  { %1409 = vpow2.f32 %v1209_v33 }
 0x9c1   :  { %v1410_v34 = vpop.eup %1409 }
 0x9c2   :  { %v514_v35 = vadd.f32 1.0, %v1410_v34 }
 0x9c4   :  { %1411 = vrcp.f32 %v514_v35 }
 0x9d1   :  { %v1412_v36 = vpop.eup %1411 }
 0x9d2   :  { %518 = vrot.lane.b32.xlu1 %v1412_v36, %s1593_s20 }
 0xa44   :  { %v519_v37 = vpop.permute.xlu1 %518 }
 0xa45   :  { %v521_v38 = vmul.f32 %v1408_v26, %v519_v37 }
 0xa47   :  { %v522_v39 = vsel %vm270_vm2, %v521_v38, -inf }
 0xa48   :  { %523 = vmax.xlane.f32.xlu0 %v522_v39 }
 0xad1   :  { %v524_v40 = vpop.xlane.xlu0 %523 }
 0xad2   :  { %v525_v41 = vsub.f32 %v521_v38, %v524_v40 }
 0xad4   :  { %v526_v42 = vmul.f32 1.442695, %v525_v41 }
 0xad6   :  { %1413 = vpow2.f32 %v526_v42 }
 0xae3   :  { %v1414_v43 = vpop.eup %1413 }
 0xae4   :  { %529 = vrot.lane.b32.xlu1 %v1414_v43, %s1594_s3 }
 0xb56   :  { %v530_v44 = vpop.permute.xlu1 %529 }
 0xb57   :  { %v532_v45 = vsel %vm281_vm3, %v530_v44, 0.0 }
 0xb58   :  { %533 = vadd.xlane.f32.xlu1 %v532_v45 }
 0xb69   :  { %627 = vrot.lane.b32.xlu1 %v1412_v36, %s1592_s19 }
 0xbe1   :  { %v534_v46 = vpop.xlane.xlu1 %533 }
 0xbe2   :  { %1415 = vrcp.f32 %v534_v46 }
 0xbe5   :  { %v628_v58 = vpop.permute.xlu1 %627 }
 0xbef   :  { %v1416_v47 = vpop.eup %1415 }
 0xbf0   :  { %v536_v48 = vmul.f32 %v1416_v47, %v1414_v43 }
 0xbf2   :  { %538 = vrot.lane.b32.xlu0 %v536_v48, %s1594_s3 }
 0xc64   :  { %v539_v49 = vpop.permute.xlu0 %538 }
 0xc65   :  { %541 = vst.msk [vmem:[#allocation9 + $0x2] sm:$0x1] %vm281_vm3, %v539_v49  ;;  %1323 = vmatmul.mubr.msk.f32.vlgmr.msra.gmra.mxu0 %vm78_vm1, %v539_v49 }
 0xc66   :  { %1337 = vmatpush3.msra.mxu0 %v1652_v3  ;;  %1344 = vmatprep.mubr.msk.f32.mxu0 %vm1591_vm0, %v1590_v0 }
 0xc67   :  { %1338 = vmatprep.subr.mxu0 %v1590_v0 }
 0xc68   :  { %1339 = vmatpush3.msra.mxu0 %v1656_v5 }
 0xc69   :  { %1340 = vmatprep.subr.mxu0 %v1590_v0 }
 0xc6a   :  { %1341 = vmatpush3.msra.mxu0 %v1659_v6 }
 0xc6b   :  { %1342 = vmatprep.subr.mxu0 %v1590_v0 }
 0xc6c   :  { %1343 = vmatpush3.msra.mxu0 %v1664_v9 }
 0xc6d   :  { %1358 = vmatprep.subr.mxu0 %v1590_v0 }
 0xd25   :  { %v611_v51 = vpop.f32.mrf.mxu0 }
 0xd26   :  { %v615_v52 = vadd.f32 %v611_v51, %v542_v50 }
 0xd27   :  { %v1324_v53 = vpop.f32.mrf.mxu0 }
 0xd28   :  { %v1211_v54 = vmul.f32 -1.442695, %v615_v52  ;;  %v792_v53 = vld [vmem:[#allocation2 + $0x5] sm:$0x1] }
 0xd2a   :  { %1417 = vpow2.f32 %v1211_v54 }
 0xd37   :  { %v1418_v55 = vpop.eup %1417 }
 0xd38   :  { %v619_v56 = vadd.f32 1.0, %v1418_v55 }
 0xd3a   :  { %1419 = vrcp.f32 %v619_v56 }
 0xd47   :  { %v1420_v57 = vpop.eup %1419 }
 0xd48   :  { %623 = vrot.lane.b32.xlu0 %v1420_v57, %s1593_s20  ;;  %v630_v59 = vmul.f32 %v1420_v57, %v628_v58 }
 0xd4c   :  { %632 = vrot.lane.b32.xlu0 %v630_v59, %s1592_s19 }
 0xdba   :  { %v624_v60 = vpop.permute.xlu0 %623 }
 0xdbb   :  { %v626_v61 = vmul.f32 %v1420_v57, %v624_v60 }
 0xdbe   :  { %v633_v62 = vpop.permute.xlu0 %632 }
 0xdbf   :  { %v635_v63 = vadd.f32 %v633_v62, %v626_v61 }
 0xdc1   :  { %v1212_v1 = vmul.f32 -1.442695, %v635_v63 }
 0xdc3   :  { %1421 = vpow2.f32 %v1212_v1 }
 0xdd0   :  { %v1422_v2 = vpop.eup %1421 }
 0xdd1   :  { %v639_v4 = vadd.f32 1.0, %v1422_v2 }
 0xdd3   :  { %1423 = vrcp.f32 %v639_v4 }
 0xde0   :  { %v1424_v7 = vpop.eup %1423 }
 0xde1   :  { %643 = vrot.lane.b32.xlu1 %v1424_v7, %s1593_s20 }
 0xe53   :  { %v644_v8 = vpop.permute.xlu1 %643 }
 0xe54   :  { %v646_v10 = vmul.f32 %v1420_v57, %v644_v8 }
 0xe56   :  { %v647_v11 = vsel %vm270_vm2, %v646_v10, -inf }
 0xe57   :  { %648 = vmax.xlane.f32.xlu0 %v647_v11 }
 0xee0   :  { %v649_v12 = vpop.xlane.xlu0 %648 }
 0xee1   :  { %v650_v13 = vsub.f32 %v646_v10, %v649_v12 }
 0xee3   :  { %v651_v14 = vmul.f32 1.442695, %v650_v13 }
 0xee5   :  { %1425 = vpow2.f32 %v651_v14 }
 0xef2   :  { %v1426_v15 = vpop.eup %1425 }
 0xef3   :  { %654 = vrot.lane.b32.xlu1 %v1426_v15, %s1594_s3 }
 0xf65   :  { %v655_v16 = vpop.permute.xlu1 %654 }
 0xf66   :  { %v657_v17 = vsel %vm281_vm3, %v655_v16, 0.0 }
 0xf67   :  { %658 = vadd.xlane.f32.xlu1 %v657_v17 }
 0xf78   :  { %752 = vrot.lane.b32.xlu1 %v1424_v7, %s1592_s19 }
 0xff0   :  { %v659_v18 = vpop.xlane.xlu1 %658 }
 0xff1   :  { %1427 = vrcp.f32 %v659_v18 }
 0xff4   :  { %v753_v30 = vpop.permute.xlu1 %752 }
 0xffe   :  { %v1428_v19 = vpop.eup %1427 }
 0xfff   :  { %v661_v20 = vmul.f32 %v1428_v19, %v1426_v15 }
0x1001   :  { %663 = vrot.lane.b32.xlu0 %v661_v20, %s1594_s3  ;;  %v917_v20 = vld [vmem:[#allocation2 + $0x6] sm:$0x1] }
0x1073   :  { %v664_v21 = vpop.permute.xlu0 %663 }
0x1074   :  { %666 = vst.msk [vmem:[#allocation9 + $0x3] sm:$0x1] %vm281_vm3, %v664_v21  ;;  %1334 = vmatmul.mubr.msk.f32.vlgmr.msra.gmra.mxu1 %vm78_vm1, %v664_v21 }
0x1075   :  { %1348 = vmatpush3.msra.mxu1 %v1652_v3  ;;  %1355 = vmatprep.mubr.msk.f32.mxu1 %vm1591_vm0, %v1590_v0 }
0x1076   :  { %1349 = vmatprep.subr.mxu1 %v1590_v0 }
0x1077   :  { %1350 = vmatpush3.msra.mxu1 %v1656_v5 }
0x1078   :  { %1351 = vmatprep.subr.mxu1 %v1590_v0 }
0x1079   :  { %1352 = vmatpush3.msra.mxu1 %v1659_v6 }
0x107a   :  { %1353 = vmatprep.subr.mxu1 %v1590_v0 }
0x107b   :  { %1354 = vmatpush3.msra.mxu1 %v1664_v9 }
0x1134   :  { %v736_v23 = vpop.f32.mrf.mxu1 }
0x1135   :  { %v740_v24 = vadd.f32 %v736_v23, %v667_v22 }
0x1136   :  { %v1335_v25 = vpop.f32.mrf.mxu1 }
0x1137   :  { %v1214_v26 = vmul.f32 -1.442695, %v740_v24 }
0x1139   :  { %1429 = vpow2.f32 %v1214_v26 }
0x1146   :  { %v1430_v27 = vpop.eup %1429 }
0x1147   :  { %v744_v28 = vadd.f32 1.0, %v1430_v27 }
0x1149   :  { %1431 = vrcp.f32 %v744_v28 }
0x1156   :  { %v1432_v29 = vpop.eup %1431 }
0x1157   :  { %748 = vrot.lane.b32.xlu0 %v1432_v29, %s1593_s20  ;;  %v755_v31 = vmul.f32 %v1432_v29, %v753_v30 }
0x115b   :  { %757 = vrot.lane.b32.xlu0 %v755_v31, %s1592_s19 }
0x11c9   :  { %v749_v32 = vpop.permute.xlu0 %748 }
0x11ca   :  { %v751_v33 = vmul.f32 %v1432_v29, %v749_v32 }
0x11cd   :  { %v758_v34 = vpop.permute.xlu0 %757 }
0x11ce   :  { %v760_v35 = vadd.f32 %v758_v34, %v751_v33 }
0x11d0   :  { %v1215_v36 = vmul.f32 -1.442695, %v760_v35 }
0x11d2   :  { %1433 = vpow2.f32 %v1215_v36 }
0x11df   :  { %v1434_v37 = vpop.eup %1433 }
0x11e0   :  { %v764_v38 = vadd.f32 1.0, %v1434_v37 }
0x11e2   :  { %1435 = vrcp.f32 %v764_v38 }
0x11ef   :  { %v1436_v39 = vpop.eup %1435 }
0x11f0   :  { %768 = vrot.lane.b32.xlu1 %v1436_v39, %s1593_s20 }
0x1262   :  { %v769_v40 = vpop.permute.xlu1 %768 }
0x1263   :  { %v771_v41 = vmul.f32 %v1432_v29, %v769_v40 }
0x1265   :  { %v772_v42 = vsel %vm270_vm2, %v771_v41, -inf }
0x1266   :  { %773 = vmax.xlane.f32.xlu0 %v772_v42 }
0x12ef   :  { %v774_v43 = vpop.xlane.xlu0 %773 }
0x12f0   :  { %v775_v44 = vsub.f32 %v771_v41, %v774_v43 }
0x12f2   :  { %v776_v45 = vmul.f32 1.442695, %v775_v44 }
0x12f4   :  { %1437 = vpow2.f32 %v776_v45 }
0x1301   :  { %v1438_v46 = vpop.eup %1437 }
0x1302   :  { %779 = vrot.lane.b32.xlu1 %v1438_v46, %s1594_s3 }
0x1374   :  { %v780_v47 = vpop.permute.xlu1 %779 }
0x1375   :  { %v782_v48 = vsel %vm281_vm3, %v780_v47, 0.0 }
0x1376   :  { %783 = vadd.xlane.f32.xlu1 %v782_v48 }
0x1387   :  { %877 = vrot.lane.b32.xlu1 %v1436_v39, %s1592_s19 }
0x13ff   :  { %v784_v49 = vpop.xlane.xlu1 %783 }
0x1400   :  { %1439 = vrcp.f32 %v784_v49 }
0x140d   :  { %v1440_v50 = vpop.eup %1439 }
0x140e   :  { %v786_v51 = vmul.f32 %v1440_v50, %v1438_v46 }
0x1410   :  { %788 = vrot.lane.b32.xlu0 %v786_v51, %s1594_s3  ;;  %v1042_v51 = vld [vmem:[#allocation2 + $0x7] sm:$0x1] }
0x1482   :  { %v789_v52 = vpop.permute.xlu0 %788 }
0x1483   :  { %791 = vst.msk [vmem:[#allocation9 + $0x4] sm:$0x1] %vm281_vm3, %v789_v52  ;;  %1345 = vmatmul.mubr.msk.f32.vlgmr.msra.gmra.mxu0 %vm78_vm1, %v789_v52 }
0x1484   :  { %1359 = vmatpush3.msra.mxu0 %v1652_v3  ;;  %1366 = vmatprep.mubr.msk.f32.mxu0 %vm1591_vm0, %v1590_v0 }
0x1485   :  { %1360 = vmatprep.subr.mxu0 %v1590_v0 }
0x1486   :  { %1361 = vmatpush3.msra.mxu0 %v1656_v5  ;;  %v878_v5 = vpop.permute.xlu1 %877 }
0x1487   :  { %1362 = vmatprep.subr.mxu0 %v1590_v0 }
0x1488   :  { %1363 = vmatpush3.msra.mxu0 %v1659_v6 }
0x1489   :  { %1364 = vmatprep.subr.mxu0 %v1590_v0 }
0x148a   :  { %1365 = vmatpush3.msra.mxu0 %v1664_v9 }
0x1543   :  { %v861_v54 = vpop.f32.mrf.mxu0 }
0x1544   :  { %v865_v55 = vadd.f32 %v861_v54, %v792_v53 }
0x1545   :  { %v1346_v56 = vpop.f32.mrf.mxu0 }
0x1546   :  { %v1217_v3 = vmul.f32 -1.442695, %v865_v55 }
0x1548   :  { %1441 = vpow2.f32 %v1217_v3 }
0x1555   :  { %v1442_v57 = vpop.eup %1441 }
0x1556   :  { %v869_v58 = vadd.f32 1.0, %v1442_v57 }
0x1558   :  { %1443 = vrcp.f32 %v869_v58 }
0x1565   :  { %v1444_v59 = vpop.eup %1443 }
0x1566   :  { %873 = vrot.lane.b32.xlu0 %v1444_v59, %s1593_s20  ;;  %v880_v60 = vmul.f32 %v1444_v59, %v878_v5 }
0x156a   :  { %882 = vrot.lane.b32.xlu0 %v880_v60, %s1592_s19 }
0x15d8   :  { %v874_v6 = vpop.permute.xlu0 %873 }
0x15d9   :  { %v876_v0 = vmul.f32 %v1444_v59, %v874_v6 }
0x15dc   :  { %v883_v61 = vpop.permute.xlu0 %882 }
0x15dd   :  { %v885_v9 = vadd.f32 %v883_v61, %v876_v0 }
0x15df   :  { %v1218_v62 = vmul.f32 -1.442695, %v885_v9 }
0x15e1   :  { %1445 = vpow2.f32 %v1218_v62 }
0x15ee   :  { %v1446_v63 = vpop.eup %1445 }
0x15ef   :  { %v889_v1 = vadd.f32 1.0, %v1446_v63 }
0x15f1   :  { %1447 = vrcp.f32 %v889_v1 }
0x15fe   :  { %v1448_v2 = vpop.eup %1447 }
0x15ff   :  { %893 = vrot.lane.b32.xlu1 %v1448_v2, %s1593_s20 }
0x1671   :  { %v894_v4 = vpop.permute.xlu1 %893 }
0x1672   :  { %v896_v7 = vmul.f32 %v1444_v59, %v894_v4 }
0x1674   :  { %v897_v8 = vsel %vm270_vm2, %v896_v7, -inf }
0x1675   :  { %898 = vmax.xlane.f32.xlu0 %v897_v8 }
0x16fe   :  { %v899_v10 = vpop.xlane.xlu0 %898 }
0x16ff   :  { %v900_v11 = vsub.f32 %v896_v7, %v899_v10 }
0x1701   :  { %v901_v12 = vmul.f32 1.442695, %v900_v11 }
0x1703   :  { %1449 = vpow2.f32 %v901_v12 }
0x1710   :  { %v1450_v13 = vpop.eup %1449 }
0x1711   :  { %904 = vrot.lane.b32.xlu1 %v1450_v13, %s1594_s3 }
0x1783   :  { %v905_v14 = vpop.permute.xlu1 %904 }
0x1784   :  { %v907_v15 = vsel %vm281_vm3, %v905_v14, 0.0 }
0x1785   :  { %908 = vadd.xlane.f32.xlu1 %v907_v15 }
0x1796   :  { %1002 = vrot.lane.b32.xlu1 %v1448_v2, %s1592_s19 }
0x180e   :  { %v909_v16 = vpop.xlane.xlu1 %908 }
0x180f   :  { %1451 = vrcp.f32 %v909_v16 }
0x1812   :  { %v1003_v28 = vpop.permute.xlu1 %1002 }
0x181c   :  { %v1452_v17 = vpop.eup %1451 }
0x181d   :  { %v911_v18 = vmul.f32 %v1452_v17, %v1450_v13 }
0x181f   :  { %913 = vrot.lane.b32.xlu0 %v911_v18, %s1594_s3 }
0x1891   :  { %v914_v19 = vpop.permute.xlu0 %913 }
0x1892   :  { %916 = vst.msk [vmem:[#allocation9 + $0x5] sm:$0x1] %vm281_vm3, %v914_v19  ;;  %1356 = vmatmul.mubr.msk.f32.vlgmr.msra.gmra.mxu1 %vm78_vm1, %v914_v19 }
0x1952   :  { %v986_v21 = vpop.f32.mrf.mxu1 }
0x1953   :  { %v990_v22 = vadd.f32 %v986_v21, %v917_v20 }
0x1954   :  { %v1357_v23 = vpop.f32.mrf.mxu1 }
0x1955   :  { %v1220_v24 = vmul.f32 -1.442695, %v990_v22 }
0x1957   :  { %1453 = vpow2.f32 %v1220_v24 }
0x1964   :  { %v1454_v25 = vpop.eup %1453 }
0x1965   :  { %v994_v26 = vadd.f32 1.0, %v1454_v25 }
0x1967   :  { %1455 = vrcp.f32 %v994_v26 }
0x1974   :  { %v1456_v27 = vpop.eup %1455 }
0x1975   :  { %998 = vrot.lane.b32.xlu0 %v1456_v27, %s1593_s20  ;;  %v1005_v29 = vmul.f32 %v1456_v27, %v1003_v28 }
0x1979   :  { %1007 = vrot.lane.b32.xlu0 %v1005_v29, %s1592_s19 }
0x19e7   :  { %v999_v30 = vpop.permute.xlu0 %998 }
0x19e8   :  { %v1001_v31 = vmul.f32 %v1456_v27, %v999_v30 }
0x19eb   :  { %v1008_v32 = vpop.permute.xlu0 %1007 }
0x19ec   :  { %v1010_v33 = vadd.f32 %v1008_v32, %v1001_v31 }
0x19ee   :  { %v1221_v34 = vmul.f32 -1.442695, %v1010_v33 }
0x19f0   :  { %1457 = vpow2.f32 %v1221_v34 }
0x19fd   :  { %v1458_v35 = vpop.eup %1457 }
0x19fe   :  { %v1014_v36 = vadd.f32 1.0, %v1458_v35 }
0x1a00   :  { %1459 = vrcp.f32 %v1014_v36 }
0x1a0d   :  { %v1460_v37 = vpop.eup %1459 }
0x1a0e   :  { %1018 = vrot.lane.b32.xlu1 %v1460_v37, %s1593_s20 }
0x1a80   :  { %v1019_v38 = vpop.permute.xlu1 %1018 }
0x1a81   :  { %v1021_v39 = vmul.f32 %v1456_v27, %v1019_v38 }
0x1a83   :  { %v1022_v40 = vsel %vm270_vm2, %v1021_v39, -inf }
0x1a84   :  { %1023 = vmax.xlane.f32.xlu0 %v1022_v40 }
0x1b0d   :  { %v1024_v41 = vpop.xlane.xlu0 %1023 }
0x1b0e   :  { %v1025_v42 = vsub.f32 %v1021_v39, %v1024_v41 }
0x1b10   :  { %v1026_v43 = vmul.f32 1.442695, %v1025_v42 }
0x1b12   :  { %1461 = vpow2.f32 %v1026_v43 }
0x1b1f   :  { %v1462_v44 = vpop.eup %1461 }
0x1b20   :  { %1029 = vrot.lane.b32.xlu1 %v1462_v44, %s1594_s3 }
0x1b92   :  { %v1030_v45 = vpop.permute.xlu1 %1029 }
0x1b93   :  { %v1032_v46 = vsel %vm281_vm3, %v1030_v45, 0.0 }
0x1b94   :  { %1033 = vadd.xlane.f32.xlu1 %v1032_v46 }
0x1ba5   :  { %1127 = vrot.lane.b32.xlu1 %v1460_v37, %s1592_s19 }
0x1c1d   :  { %v1034_v47 = vpop.xlane.xlu1 %1033 }
0x1c1e   :  { %1463 = vrcp.f32 %v1034_v47 }
0x1c21   :  { %v1128_v58 = vpop.permute.xlu1 %1127 }
0x1c2b   :  { %v1464_v48 = vpop.eup %1463 }
0x1c2c   :  { %v1036_v49 = vmul.f32 %v1464_v48, %v1462_v44 }
0x1c2e   :  { %1038 = vrot.lane.b32.xlu0 %v1036_v49, %s1594_s3 }
0x1ca0   :  { %v1039_v50 = vpop.permute.xlu0 %1038 }
0x1ca1   :  { %1041 = vst.msk [vmem:[#allocation9 + $0x6] sm:$0x1] %vm281_vm3, %v1039_v50  ;;  %1367 = vmatmul.mubr.msk.f32.vlgmr.msra.gmra.mxu0 %vm78_vm1, %v1039_v50 }
0x1d61   :  { %v1111_v52 = vpop.f32.mrf.mxu0 }
0x1d62   :  { %v1115_v53 = vadd.f32 %v1111_v52, %v1042_v51 }
0x1d63   :  { %v1368_v54 = vpop.f32.mrf.mxu0 }
0x1d64   :  { %v1223_v55 = vmul.f32 -1.442695, %v1115_v53 }
0x1d66   :  { %1465 = vpow2.f32 %v1223_v55 }
0x1d73   :  { %v1466_v56 = vpop.eup %1465 }
0x1d74   :  { %v1119_v3 = vadd.f32 1.0, %v1466_v56 }
0x1d76   :  { %1467 = vrcp.f32 %v1119_v3 }
0x1d83   :  { %v1468_v57 = vpop.eup %1467 }
0x1d84   :  { %1123 = vrot.lane.b32.xlu0 %v1468_v57, %s1593_s20  ;;  %v1130_v59 = vmul.f32 %v1468_v57, %v1128_v58 }
0x1d88   :  { %1132 = vrot.lane.b32.xlu0 %v1130_v59, %s1592_s19 }
0x1df6   :  { %v1124_v5 = vpop.permute.xlu0 %1123 }
0x1df7   :  { %v1126_v60 = vmul.f32 %v1468_v57, %v1124_v5 }
0x1dfa   :  { %v1133_v6 = vpop.permute.xlu0 %1132 }
0x1dfb   :  { %v1135_v0 = vadd.f32 %v1133_v6, %v1126_v60 }
0x1dfd   :  { %v1224_v61 = vmul.f32 -1.442695, %v1135_v0 }
0x1dff   :  { %1469 = vpow2.f32 %v1224_v61 }
0x1e0c   :  { %v1470_v9 = vpop.eup %1469 }
0x1e0d   :  { %v1139_v62 = vadd.f32 1.0, %v1470_v9 }
0x1e0f   :  { %1471 = vrcp.f32 %v1139_v62 }
0x1e1c   :  { %v1472_v63 = vpop.eup %1471 }
0x1e1d   :  { %1167 = vst.msk [vmem:[#allocation10] sm:$0x1] %vm281_vm3, %v1472_v63  ;;  %1143 = vrot.lane.b32.xlu1 %v1472_v63, %s1593_s20 }
0x1e8f   :  { %v1144_v1 = vpop.permute.xlu1 %1143 }
0x1e90   :  { %v1146_v2 = vmul.f32 %v1468_v57, %v1144_v1 }
0x1e92   :  { %v1147_v4 = vsel %vm270_vm2, %v1146_v2, -inf }
0x1e93   :  { %1148 = vmax.xlane.f32.xlu0 %v1147_v4 }
0x1f1c   :  { %v1149_v7 = vpop.xlane.xlu0 %1148 }
0x1f1d   :  { %v1150_v8 = vsub.f32 %v1146_v2, %v1149_v7 }
0x1f1f   :  { %v1151_v10 = vmul.f32 1.442695, %v1150_v8 }
0x1f21   :  { %1473 = vpow2.f32 %v1151_v10 }
0x1f2e   :  { %v1474_v11 = vpop.eup %1473 }
0x1f2f   :  { %1154 = vrot.lane.b32.xlu1 %v1474_v11, %s1594_s3 }
0x1fa1   :  { %v1155_v12 = vpop.permute.xlu1 %1154 }
0x1fa2   :  { %v1157_v13 = vsel %vm281_vm3, %v1155_v12, 0.0 }
0x1fa3   :  { %1158 = vadd.xlane.f32.xlu1 %v1157_v13 }
0x202c   :  { %v1159_v14 = vpop.xlane.xlu1 %1158 }
0x202d   :  { %1475 = vrcp.f32 %v1159_v14 }
0x202e   :  { %1548 = shalt.err (!%p1545_p5)
}
0x202f   :  { %1187 = dma.vmem_to_hbm [thread:$0]  %s1185_s22, 16, %s1844_s7, [#allocation11]  }
0x2030   :  { %s1596_s27 = smov [#allocation9]  }
0x2031   :  { %s1174_s28 = sshll.u32 %s1596_s27, 4  ;;  %s1175_s28 = int_to_ptr.vmem [resolvable:$true] %s1174_s28 }
0x2032   :  { %s1557_s29 = scalar_lea.vmem %s1175_s28, 128  ;;  %p1562_p7 = scmp.lt.s32.totalorder %s1175_s28, %s1175_s28 }
0x2033   :  { %p1558_p6 = scmp.ne.s32.totalorder %s1175_s28, %s1557_s29  ;;  %p1563_p8 = scmp.lt.s32.totalorder %s1557_s29, %s1557_s29 }
0x2035   :  { %p1564_p9 = por %p1563_p8, %p1562_p7 }
0x2037   :  { %p1565_p10 = pnand %p1564_p9, %p1558_p6 }
0x203a   :  { %v1476_v15 = vpop.eup %1475 }
0x203b   :  { %v1161_v16 = vmul.f32 %v1476_v15, %v1474_v11 }
0x203d   :  { %1163 = vrot.lane.b32.xlu0 %v1161_v16, %s1594_s3 }
0x20af   :  { %v1164_v17 = vpop.permute.xlu0 %1163 }
0x20b0   :  { %1166 = vst.msk [vmem:[#allocation9 + $0x7] sm:$0x1] %vm281_vm3, %v1164_v17 }
0x20b1   :  { %1568 = shalt.err (!%p1565_p10)
}
0x20b2   :  { %1177 = dma.vmem_to_hbm [thread:$0]  %s1175_s28, 128, %s1843_s6, [#allocation5]  }
0x20b3   :  { %1581 = dma.done.wait [#allocation5], 128  }
0x20b4   :  { %1582 = vsyncadd [#allocation5], 4294967168 }
0x20b5   :  { %1583 = dma.done.wait [#allocation11], 16  }
0x20b6   :  { %1584 = vsyncadd [#allocation11], 4294967280 }
0x20b7   :  { %1194 = vsyncpa [#allocation4], 1 }
0x20b8   :  { %1195 = vsyncpa [#allocation7], 1 }
0x20b9   :  { %1196 = vsyncpa [#allocation5], 1 }
0x20ba   :  { %1197 = vsyncpa [#allocation11], 1 }

</bundles_post_ra>
